<compile_context>
chip_gen: v7x
topology: tpu7x:2x2x1
jax: 0.10.0
libtpu: 0.0.40
codegen_flags: <defaults>
</compile_context>

<pallas_src>
import functools

import jax
import jax.numpy as jnp
import numpy as np
from jax import lax
from jax.experimental import pallas as pl
from jax.experimental.pallas import tpu as pltpu


# --------------------------------------------------------------------------------------
# In-kernel helpers
# --------------------------------------------------------------------------------------
def _axis_mask(size, lo, hi, axis):
    """(1,·,·) bool mask selecting positions lo..hi (inclusive) along `axis` (1 or 2)."""
    shape = [1, 1, 1]
    shape[axis] = size
    idx = lax.broadcasted_iota(jnp.int32, tuple(shape), axis)
    return (idx >= lo) & (idx <= hi)


def _masked_plane_sum(x, mask):
    """sum(where(mask, x, 0)) over (H', W') per D plane -> (d_tile, 1, 1) f32."""
    xm = jnp.where(mask, x, 0.0)
    s = jnp.sum(xm, axis=2, keepdims=True)
    return jnp.sum(s, axis=1, keepdims=True)


# --------------------------------------------------------------------------------------
# Kernels
# --------------------------------------------------------------------------------------
def _grad_kernel(fv_ref, out_ref, work_ref, *, d_total, d_tile, halo, flag_l1):
    """First-order gradient energy over one D-slab of one (batch*channel) slice.

    fv_ref:   (1, d_tile, H, W) input slab (original dtype)
    out_ref:  (1, 1, 1) f32 partial sum for this B slice (resident across D slabs)
    work_ref: (d_tile + 2*halo, H, W) f32 persistent work buffer (carries the D halo)
    """
    dt = pl.program_id(1)
    hh, ww = fv_ref.shape[2], fv_ref.shape[3]

    @pl.when(dt == 0)
    def _():
        out_ref[...] = jnp.zeros_like(out_ref)

    @pl.when(dt > 0)
    def _():
        # Halo carry: trailing 2*halo planes of the previous slab -> head of the buffer.
        # Correct only because the D axis is the innermost ("arbitrary") grid axis and
        # iterates sequentially on the core that owns this B slice.
        work_ref[0:2 * halo] = work_ref[d_tile:d_tile + 2 * halo]

    work_ref[2 * halo:2 * halo + d_tile] = fv_ref[0].astype(jnp.float32)

    w_m = work_ref[0:d_tile]                 # f(z-1) planes
    w_c = work_ref[1:1 + d_tile]             # center planes
    w_p = work_ref[2:2 + d_tile]             # f(z+1) planes

    # Unscaled central differences (true derivative = diff / 2; scale folded in wrapper).
    dx = w_p - w_m                                # centers: all (h, w)
    dy = w_c[:, 2:, :] - w_c[:, :-2, :]           # centers: h = j + 1, all w
    dz = w_c[:, :, 2:] - w_c[:, :, :-2]           # centers: w = k + 1, all h
    if flag_l1:
        fx, fy, fz = jnp.abs(dx), jnp.abs(dy), jnp.abs(dz)
    else:
        fx, fy, fz = dx * dx, dy * dy, dz * dz

    h_in = _axis_mask(hh, halo, hh - 1 - halo, axis=1)
    w_in = _axis_mask(ww, halo, ww - 1 - halo, axis=2)
    ps = (_masked_plane_sum(fx, h_in & w_in)
          + _masked_plane_sum(fy, w_in)
          + _masked_plane_sum(fz, h_in))          # (d_tile, 1, 1)

    # Per-plane D validity (garbage carry at dt == 0 and the cdiv tail past D).
    g = dt * d_tile - halo + lax.broadcasted_iota(jnp.int32, (d_tile, 1, 1), 0)
    valid = (g >= halo) & (g <= d_total - 1 - halo)
    out_ref[...] = out_ref[...] + jnp.sum(jnp.where(valid, ps, 0.0))


def _bend_kernel(fv_ref, out_ref, work_ref, *, d_total, d_tile, halo):
    """Bending energy over one D-slab; second derivatives fused directly from f."""
    dt = pl.program_id(1)
    hh, ww = fv_ref.shape[2], fv_ref.shape[3]

    @pl.when(dt == 0)
    def _():
        out_ref[...] = jnp.zeros_like(out_ref)

    @pl.when(dt > 0)
    def _():
        work_ref[0:2 * halo] = work_ref[d_tile:d_tile + 2 * halo]

    work_ref[2 * halo:2 * halo + d_tile] = fv_ref[0].astype(jnp.float32)

    w_m2 = work_ref[0:d_tile]
    w_m1 = work_ref[1:1 + d_tile]
    c = work_ref[2:2 + d_tile]               # center planes
    w_p1 = work_ref[3:3 + d_tile]
    w_p2 = work_ref[4:4 + d_tile]

    dD1 = w_p1 - w_m1                        # 2*df/dD at center planes (reused twice)
    dH1 = c[:, 2:, :] - c[:, :-2, :]         # 2*df/dH, centers h = j + 1 (reused)

    # Unscaled second derivatives (true derivative = diff / 4; 1/16 folded in wrapper).
    dxx = w_p2 - 2.0 * c + w_m2                               # centers: all (h, w)
    dyy = c[:, 4:, :] - 2.0 * c[:, 2:-2, :] + c[:, :-4, :]    # centers: h = j + 2
    dzz = c[:, :, 4:] - 2.0 * c[:, :, 2:-2] + c[:, :, :-4]    # centers: w = k + 2
    dxy = dD1[:, 2:, :] - dD1[:, :-2, :]                      # centers: h = j + 1
    dxz = dD1[:, :, 2:] - dD1[:, :, :-2]                      # centers: w = k + 1
    dyz = dH1[:, :, 2:] - dH1[:, :, :-2]                      # centers: (j + 1, k + 1)

    h_in = _axis_mask(hh, 2, hh - 3, axis=1)          # h in [2, H-3]
    w_in = _axis_mask(ww, 2, ww - 3, axis=2)          # w in [2, W-3]
    h_in1 = _axis_mask(hh - 2, 1, hh - 4, axis=1)     # j in [1, H-4]  (h = j + 1)
    w_in1 = _axis_mask(ww - 2, 1, ww - 4, axis=2)     # k in [1, W-4]  (w = k + 1)

    ps = (_masked_plane_sum(dxx * dxx, h_in & w_in)
          + _masked_plane_sum(dyy * dyy, w_in)
          + _masked_plane_sum(dzz * dzz, h_in)
          + 2.0 * _masked_plane_sum(dxy * dxy, h_in1 & w_in)
          + 2.0 * _masked_plane_sum(dxz * dxz, h_in & w_in1)
          + 2.0 * _masked_plane_sum(dyz * dyz, h_in1 & w_in1))

    g = dt * d_tile - halo + lax.broadcasted_iota(jnp.int32, (d_tile, 1, 1), 0)
    valid = (g >= halo) & (g <= d_total - 1 - halo)
    out_ref[...] = out_ref[...] + jnp.sum(jnp.where(valid, ps, 0.0))


# --------------------------------------------------------------------------------------
# Wrapper
# --------------------------------------------------------------------------------------
def _vmem_capacity_bytes(default_bytes=64 * 1024 * 1024):
    """Per-core VMEM capacity; default is the conservative v7x figure."""
    try:
        cap = getattr(pltpu.get_tpu_info(), "vmem_capacity_bytes", None)
        if cap:
            return int(cap)
    except Exception:
        pass
    return int(default_bytes)


def _auto_d_tile(d, hh, ww, halo, in_itemsize, n_tmp, budget_bytes):
    """Largest slab depth whose estimated live VMEM fits in budget_bytes."""
    plane_f32 = hh * ww * 4
    plane_in = hh * ww * in_itemsize
    # double-buffered input slab + f32 work buffer (+halo) + n_tmp slab-sized temps
    per_plane = 2 * plane_in + (1 + n_tmp) * plane_f32
    fixed = 2 * halo * plane_f32
    d_tile = (budget_bytes - fixed) // per_plane
    return int(min(max(d_tile, 2 * halo), d))


class DisplacementRegularizer:
    """JAX/Pallas re-implementation of the PyTorch DisplacementRegularizer."""

    def __init__(self, energy_type, loss_weight: float = 1.0, reduction: str = "mean",
                 d_tile=None):
        assert energy_type in ("bending", "gradient-l1", "gradient-l2")
        if reduction not in ("none", "mean", "sum"):
            raise ValueError(f"Unsupported reduction mode: {reduction}")
        # NOTE: `reduction` does not affect the forward pass (matches the PyTorch module).
        self.energy_type = energy_type
        self.loss_weight = loss_weight
        self.reduction = reduction
        self.d_tile = d_tile          # None -> derive from the device's VMEM capacity

    def __call__(self, disp, _=None, weight=None):
        n, c, d, hh, ww = disp.shape
        assert c == 3, "displacement field must have 3 channels"
        b = n * c
        fv = disp.reshape(b, d, hh, ww)          # original dtype; cast per tile in-kernel

        halo = 2 if self.energy_type == "bending" else 1
        assert d >= 2 * halo + 1 and hh >= 2 * halo + 1 and ww >= 2 * halo + 1

        vmem_cap = _vmem_capacity_bytes()
        n_tmp = 5 if self.energy_type == "bending" else 4
        if self.d_tile is None:
            d_tile = _auto_d_tile(d, hh, ww, halo, fv.dtype.itemsize, n_tmp, vmem_cap // 3)
        else:
            d_tile = int(min(max(self.d_tile, 2 * halo), d))
        nd = pl.cdiv(d, d_tile)                  # non-divisor D handled by the plane mask

        if self.energy_type == "bending":
            kernel = functools.partial(_bend_kernel, d_total=d, d_tile=d_tile, halo=halo)
            count = b * (d - 4) * (hh - 4) * (ww - 4)
            scale = 1.0 / (16.0 * count)              # folded 1/4^2 stencil scale + mean
            flops = 60 * b * d * hh * ww
        else:
            flag_l1 = self.energy_type == "gradient-l1"
            kernel = functools.partial(_grad_kernel, d_total=d, d_tile=d_tile,
                                       halo=halo, flag_l1=flag_l1)
            count = b * (d - 2) * (hh - 2) * (ww - 2)
            stencil = 2.0 if flag_l1 else 4.0         # folded 1/2 (or 1/2^2) scale
            scale = 1.0 / (stencil * count * 3.0)
            flops = 15 * b * d * hh * ww

        partial_sums = pl.pallas_call(
            kernel,
            out_shape=jax.ShapeDtypeStruct((b, 1, 1), jnp.float32),
            grid_spec=pltpu.PrefetchScalarGridSpec(
                num_scalar_prefetch=0,
                # B is megacore-parallel; the D-slab axis MUST stay innermost and
                # sequential (the work-buffer halo carry relies on that ordering).
                grid=(b, nd),
                in_specs=[pl.BlockSpec((1, d_tile, hh, ww),
                                       lambda bi, di: (bi, di, 0, 0))],
                out_specs=pl.BlockSpec((1, 1, 1), lambda bi, di: (bi, 0, 0)),
                scratch_shapes=[pltpu.VMEM((d_tile + 2 * halo, hh, ww), jnp.float32)],
            ),
            compiler_params=pltpu.CompilerParams(
                dimension_semantics=("parallel", "arbitrary"),
                vmem_limit_bytes=int(vmem_cap * 3 // 4),
            ),
            cost_estimate=pl.CostEstimate(
                flops=int(flops),
                transcendentals=0,
                bytes_accessed=int(fv.size * fv.dtype.itemsize + b * 4),
            ),
        )(fv)

        energy = jnp.sum(partial_sums) * jnp.float32(scale)
        return energy * jnp.float32(self.loss_weight)


# --------------------------------------------------------------------------------------
# Pure-JAX reference (mirrors the PyTorch forward)
# --------------------------------------------------------------------------------------
def _ref_energy(disp, energy_type):
    gx = lambda f: (f[:, 2:, 1:-1, 1:-1] - f[:, :-2, 1:-1, 1:-1]) / 2
    gy = lambda f: (f[:, 1:-1, 2:, 1:-1] - f[:, 1:-1, :-2, 1:-1]) / 2
    gz = lambda f: (f[:, 1:-1, 1:-1, 2:] - f[:, 1:-1, 1:-1, :-2]) / 2
    gt = lambda T, fn: jnp.stack([fn(T[:, i]) for i in range(3)], axis=1)
    dTdx, dTdy, dTdz = gt(disp, gx), gt(disp, gy), gt(disp, gz)
    if energy_type == "gradient-l2":
        return jnp.mean(dTdx**2 + dTdy**2 + dTdz**2) / 3.0
    if energy_type == "gradient-l1":
        return jnp.mean(jnp.abs(dTdx) + jnp.abs(dTdy) + jnp.abs(dTdz)) / 3.0
    dxx, dyy, dzz = gt(dTdx, gx), gt(dTdy, gy), gt(dTdz, gz)
    dxy, dyz, dxz = gt(dTdx, gy), gt(dTdy, gz), gt(dTdx, gz)
    return jnp.mean(dxx**2 + dyy**2 + dzz**2 + 2 * dxy**2 + 2 * dxz**2 + 2 * dyz**2)


if __name__ == "__main__":
    key = jax.random.PRNGKey(0)
    # (N, C=3, D, H, W) -- small synthetic displacement field
    disp = jax.random.normal(key, (2, 3, 12, 16, 24), dtype=jnp.float32)

    loss_weight = 1.5
    for et in ("gradient-l1", "gradient-l2", "bending"):
        ref = jax.block_until_ready(_ref_energy(disp, et) * loss_weight)
        # d_tile=5 exercises the multi-slab halo carry AND the cdiv tail mask (12 % 5 != 0);
        # None exercises the VMEM-budget-derived single-slab path.
        for d_tile in (5, None):
            mod = DisplacementRegularizer(et, loss_weight=loss_weight, d_tile=d_tile)
            out = jax.block_until_ready(mod(disp, None))
            np.testing.assert_allclose(np.asarray(out), np.asarray(ref),
                                       rtol=1e-4, atol=1e-6)

    print("KERNEL_OK")
</pallas_src>

<mosaic_0001>
module attributes {stable_mosaic.version = 11 : i64} {
  func.func @_grad_kernel(%arg0: i32, %arg1: i32, %arg2: memref<1x5x16x24xf32, #tpu.memory_space<vmem>>, %arg3: memref<1x1x1xf32, #tpu.memory_space<vmem>>, %arg4: memref<7x16x24xf32, #tpu.memory_space<vmem>>) attributes {dimension_semantics = [#tpu.dimension_semantics<parallel>, #tpu.dimension_semantics<arbitrary>], iteration_bounds = array<i64: 6, 3>, scalar_prefetch = 0 : i64, scratch_operands = 1 : i64, tpu.core_type = #tpu.core_type<tc>, window_params = [{transform_indices = @transform_0, window_bounds = array<i64: 1, 5, 16, 24>}, {transform_indices = @transform_1, window_bounds = array<i64: 1, 1, 1>}]} {
    %c0_i32 = arith.constant 0 : i32
    %0 = arith.cmpi eq, %arg1, %c0_i32 : i32
    %1 = arith.extui %0 : i1 to i32
    %c0_i32_0 = arith.constant 0 : i32
    %2 = arith.cmpi ne, %1, %c0_i32_0 : i32
    scf.if %2 {
      %cst_35 = arith.constant 0.000000e+00 : f32
      %83 = vector.broadcast %cst_35 : f32 to vector<1x1x1xf32>
      %c0_36 = arith.constant 0 : index
      %c0_37 = arith.constant 0 : index
      %c0_38 = arith.constant 0 : index
      %84 = vector.load %arg3[%c0_36, %c0_37, %c0_38] : memref<1x1x1xf32, #tpu.memory_space<vmem>>, vector<1x1x1xf32>
      tpu.vector_store %arg3[%c0_36, %c0_37, %c0_38], %83 {strides = array<i32>} : memref<1x1x1xf32, #tpu.memory_space<vmem>>, vector<1x1x1xf32>,
    } else {
    }
    %c0_i32_1 = arith.constant 0 : i32
    %3 = arith.cmpi sgt, %arg1, %c0_i32_1 : i32
    %4 = arith.extui %3 : i1 to i32
    %c0_i32_2 = arith.constant 0 : i32
    %5 = arith.cmpi ne, %4, %c0_i32_2 : i32
    scf.if %5 {
      %c5 = arith.constant 5 : index
      %c0_35 = arith.constant 0 : index
      %c0_36 = arith.constant 0 : index
      %83 = vector.load %arg4[%c5, %c0_35, %c0_36] : memref<7x16x24xf32, #tpu.memory_space<vmem>>, vector<2x16x24xf32>
      %c0_37 = arith.constant 0 : index
      %c0_38 = arith.constant 0 : index
      %c0_39 = arith.constant 0 : index
      %84 = vector.load %arg4[%c0_37, %c0_38, %c0_39] : memref<7x16x24xf32, #tpu.memory_space<vmem>>, vector<2x16x24xf32>
      tpu.vector_store %arg4[%c0_37, %c0_38, %c0_39], %83 {strides = array<i32>} : memref<7x16x24xf32, #tpu.memory_space<vmem>>, vector<2x16x24xf32>,
    } else {
    }
    %c0 = arith.constant 0 : index
    %c0_3 = arith.constant 0 : index
    %c0_4 = arith.constant 0 : index
    %c0_5 = arith.constant 0 : index
    %6 = vector.load %arg2[%c0, %c0_3, %c0_4, %c0_5] : memref<1x5x16x24xf32, #tpu.memory_space<vmem>>, vector<1x5x16x24xf32>
    %7 = vector.shape_cast %6 : vector<1x5x16x24xf32> to vector<5x16x24xf32>
    %c2 = arith.constant 2 : index
    %c0_6 = arith.constant 0 : index
    %c0_7 = arith.constant 0 : index
    %8 = vector.load %arg4[%c2, %c0_6, %c0_7] : memref<7x16x24xf32, #tpu.memory_space<vmem>>, vector<5x16x24xf32>
    tpu.vector_store %arg4[%c2, %c0_6, %c0_7], %7 {strides = array<i32>} : memref<7x16x24xf32, #tpu.memory_space<vmem>>, vector<5x16x24xf32>,
    %c0_8 = arith.constant 0 : index
    %c0_9 = arith.constant 0 : index
    %c0_10 = arith.constant 0 : index
    %9 = vector.load %arg4[%c0_8, %c0_9, %c0_10] : memref<7x16x24xf32, #tpu.memory_space<vmem>>, vector<5x16x24xf32>
    %c1 = arith.constant 1 : index
    %c0_11 = arith.constant 0 : index
    %c0_12 = arith.constant 0 : index
    %10 = vector.load %arg4[%c1, %c0_11, %c0_12] : memref<7x16x24xf32, #tpu.memory_space<vmem>>, vector<5x16x24xf32>
    %c2_13 = arith.constant 2 : index
    %c0_14 = arith.constant 0 : index
    %c0_15 = arith.constant 0 : index
    %11 = vector.load %arg4[%c2_13, %c0_14, %c0_15] : memref<7x16x24xf32, #tpu.memory_space<vmem>>, vector<5x16x24xf32>
    %12 = arith.subf %11, %9 : vector<5x16x24xf32>
    %13 = vector.extract_strided_slice %10 {offsets = [0, 2, 0], sizes = [5, 14, 24], strides = [1, 1, 1]} : vector<5x16x24xf32> to vector<5x14x24xf32>
    %14 = vector.extract_strided_slice %10 {offsets = [0, 0, 0], sizes = [5, 14, 24], strides = [1, 1, 1]} : vector<5x16x24xf32> to vector<5x14x24xf32>
    %15 = arith.subf %13, %14 : vector<5x14x24xf32>
    %16 = vector.extract_strided_slice %10 {offsets = [0, 0, 2], sizes = [5, 16, 22], strides = [1, 1, 1]} : vector<5x16x24xf32> to vector<5x16x22xf32>
    %17 = vector.extract_strided_slice %10 {offsets = [0, 0, 0], sizes = [5, 16, 22], strides = [1, 1, 1]} : vector<5x16x24xf32> to vector<5x16x22xf32>
    %18 = arith.subf %16, %17 : vector<5x16x22xf32>
    %19 = math.absf %12 : vector<5x16x24xf32>
    %20 = math.absf %15 : vector<5x14x24xf32>
    %21 = math.absf %18 : vector<5x16x22xf32>
    %22 = tpu.iota {dimensions = array<i32: 1>} : vector<1x16x1xi32>
    %c1_i32 = arith.constant 1 : i32
    %23 = vector.broadcast %c1_i32 : i32 to vector<1x16x1xi32>
    %24 = arith.cmpi sge, %22, %23 : vector<1x16x1xi32>
    %c14_i32 = arith.constant 14 : i32
    %25 = vector.broadcast %c14_i32 : i32 to vector<1x16x1xi32>
    %26 = arith.cmpi sle, %22, %25 : vector<1x16x1xi32>
    %27 = arith.andi %24, %26 : vector<1x16x1xi1>
    %28 = tpu.iota {dimensions = array<i32: 2>} : vector<1x1x24xi32>
    %c1_i32_16 = arith.constant 1 : i32
    %29 = vector.broadcast %c1_i32_16 : i32 to vector<1x1x24xi32>
    %30 = arith.cmpi sge, %28, %29 : vector<1x1x24xi32>
    %c22_i32 = arith.constant 22 : i32
    %31 = vector.broadcast %c22_i32 : i32 to vector<1x1x24xi32>
    %32 = arith.cmpi sle, %28, %31 : vector<1x1x24xi32>
    %33 = arith.andi %30, %32 : vector<1x1x24xi1>
    %34 = vector.broadcast %27 : vector<1x16x1xi1> to vector<1x16x24xi1>
    %35 = vector.broadcast %33 : vector<1x1x24xi1> to vector<1x16x24xi1>
    %36 = arith.andi %34, %35 : vector<1x16x24xi1>
    %cst = arith.constant 0.000000e+00 : f32
    %37 = vector.shape_cast %36 : vector<1x16x24xi1> to vector<1x16x24xi1>
    %38 = vector.broadcast %37 : vector<1x16x24xi1> to vector<5x16x24xi1>
    %39 = vector.broadcast %cst : f32 to vector<5x16x24xf32>
    %40 = arith.select %38, %19, %39 : vector<5x16x24xi1>, vector<5x16x24xf32>
    %cst_17 = arith.constant dense<0.000000e+00> : vector<5x16xf32>
    %41 = vector.multi_reduction <add>, %40, %cst_17 [2] : vector<5x16x24xf32> to vector<5x16xf32>
    %42 = vector.shape_cast %41 : vector<5x16xf32> to vector<5x16x1xf32>
    %cst_18 = arith.constant dense<0.000000e+00> : vector<5x1xf32>
    %43 = vector.multi_reduction <add>, %42, %cst_18 [1] : vector<5x16x1xf32> to vector<5x1xf32>
    %44 = vector.shape_cast %43 : vector<5x1xf32> to vector<5x1x1xf32>
    %cst_19 = arith.constant 0.000000e+00 : f32
    %45 = vector.shape_cast %33 : vector<1x1x24xi1> to vector<1x1x24xi1>
    %46 = vector.broadcast %45 : vector<1x1x24xi1> to vector<5x14x24xi1>
    %47 = vector.broadcast %cst_19 : f32 to vector<5x14x24xf32>
    %48 = arith.select %46, %20, %47 : vector<5x14x24xi1>, vector<5x14x24xf32>
    %cst_20 = arith.constant dense<0.000000e+00> : vector<5x14xf32>
    %49 = vector.multi_reduction <add>, %48, %cst_20 [2] : vector<5x14x24xf32> to vector<5x14xf32>
    %50 = vector.shape_cast %49 : vector<5x14xf32> to vector<5x14x1xf32>
    %cst_21 = arith.constant dense<0.000000e+00> : vector<5x1xf32>
    %51 = vector.multi_reduction <add>, %50, %cst_21 [1] : vector<5x14x1xf32> to vector<5x1xf32>
    %52 = vector.shape_cast %51 : vector<5x1xf32> to vector<5x1x1xf32>
    %53 = arith.addf %44, %52 : vector<5x1x1xf32>
    %cst_22 = arith.constant 0.000000e+00 : f32
    %54 = vector.shape_cast %27 : vector<1x16x1xi1> to vector<1x16x1xi1>
    %55 = vector.broadcast %54 : vector<1x16x1xi1> to vector<5x16x22xi1>
    %56 = vector.broadcast %cst_22 : f32 to vector<5x16x22xf32>
    %57 = arith.select %55, %21, %56 : vector<5x16x22xi1>, vector<5x16x22xf32>
    %cst_23 = arith.constant dense<0.000000e+00> : vector<5x16xf32>
    %58 = vector.multi_reduction <add>, %57, %cst_23 [2] : vector<5x16x22xf32> to vector<5x16xf32>
    %59 = vector.shape_cast %58 : vector<5x16xf32> to vector<5x16x1xf32>
    %cst_24 = arith.constant dense<0.000000e+00> : vector<5x1xf32>
    %60 = vector.multi_reduction <add>, %59, %cst_24 [1] : vector<5x16x1xf32> to vector<5x1xf32>
    %61 = vector.shape_cast %60 : vector<5x1xf32> to vector<5x1x1xf32>
    %62 = arith.addf %53, %61 : vector<5x1x1xf32>
    %c5_i32 = arith.constant 5 : i32
    %63 = arith.muli %arg1, %c5_i32 : i32
    %c1_i32_25 = arith.constant 1 : i32
    %64 = arith.subi %63, %c1_i32_25 : i32
    %65 = tpu.iota {dimensions = array<i32: 0>} : vector<5x1x1xi32>
    %66 = vector.broadcast %64 : i32 to vector<5x1x1xi32>
    %67 = arith.addi %66, %65 : vector<5x1x1xi32>
    %c1_i32_26 = arith.constant 1 : i32
    %68 = vector.broadcast %c1_i32_26 : i32 to vector<5x1x1xi32>
    %69 = arith.cmpi sge, %67, %68 : vector<5x1x1xi32>
    %c10_i32 = arith.constant 10 : i32
    %70 = vector.broadcast %c10_i32 : i32 to vector<5x1x1xi32>
    %71 = arith.cmpi sle, %67, %70 : vector<5x1x1xi32>
    %72 = arith.andi %69, %71 : vector<5x1x1xi1>
    %c0_27 = arith.constant 0 : index
    %c0_28 = arith.constant 0 : index
    %c0_29 = arith.constant 0 : index
    %73 = vector.load %arg3[%c0_27, %c0_28, %c0_29] : memref<1x1x1xf32, #tpu.memory_space<vmem>>, vector<1x1x1xf32>
    %cst_30 = arith.constant 0.000000e+00 : f32
    %74 = vector.broadcast %cst_30 : f32 to vector<5x1x1xf32>
    %75 = arith.select %72, %62, %74 : vector<5x1x1xi1>, vector<5x1x1xf32>
    %76 = vector.shape_cast %75 : vector<5x1x1xf32> to vector<1x5x1x1xf32>
    %cst_31 = arith.constant dense<0.000000e+00> : vector<1xf32>
    %77 = vector.multi_reduction <add>, %76, %cst_31 [1, 2, 3] : vector<1x5x1x1xf32> to vector<1xf32>
    %78 = vector.shape_cast %77 : vector<1xf32> to vector<1x1x1x1xf32>
    %79 = vector.extract %78[0, 0, 0, 0] : f32 from vector<1x1x1x1xf32>
    %80 = vector.broadcast %79 : f32 to vector<1x1x1xf32>
    %81 = arith.addf %73, %80 : vector<1x1x1xf32>
    %c0_32 = arith.constant 0 : index
    %c0_33 = arith.constant 0 : index
    %c0_34 = arith.constant 0 : index
    %82 = vector.load %arg3[%c0_32, %c0_33, %c0_34] : memref<1x1x1xf32, #tpu.memory_space<vmem>>, vector<1x1x1xf32>
    tpu.vector_store %arg3[%c0_32, %c0_33, %c0_34], %81 {strides = array<i32>} : memref<1x1x1xf32, #tpu.memory_space<vmem>>, vector<1x1x1xf32>,
    return
  }
  func.func @transform_0(%arg0: i32, %arg1: i32) -> (i32, i32, i32, i32) {
    %c0_i32 = arith.constant 0 : i32
    %c0_i32_0 = arith.constant 0 : i32
    %c0_i32_1 = arith.constant 0 : i32
    return %arg0, %arg1, %c0_i32, %c0_i32_0 : i32, i32, i32, i32
  }
  func.func @transform_1(%arg0: i32, %arg1: i32) -> (i32, i32, i32) {
    %c0_i32 = arith.constant 0 : i32
    %c0_i32_0 = arith.constant 0 : i32
    %c0_i32_1 = arith.constant 0 : i32
    return %arg0, %c0_i32, %c0_i32_0 : i32, i32, i32
  }
}

</mosaic_0001>

<bundles_post_ra>
// kernel: tpu_custom_call.1
= control target key start
LH: loop header
LB: loop body
LE: loop exit
PB: predicated region body
PF: predicated region fallthrough
CT: control target
= control target key end

     0   :  { %6 = vsyncpa [#allocation4], 0  ;;  %s1508_s0 = inlined_call_operand.hbm [shape: f32[6,12,16,24], index: 0, kind: input, shape index: {}]   ;;  %s1509_s1 = inlined_call_operand.vmem [shape: f32[6,1,1], index: 1, kind: output, shape index: {}]  }
   0x1   :  { %8 = vsyncpa [#allocation4 + $0x1], 0  ;;  %s1039_s6 = smov 0   ;;  %s1041_s7 = smov 0  }
   0x2   :  { %s1043_s8 = smov 0   ;;  %s1045_s9 = smov 0  }
   0x3   :  { %s1047_s10 = smov 0   ;;  %s1049_s11 = smov 0  }
   0x4   :  { %s1051_s12 = smov 0   ;;  %s1053_s13 = smov 0  }
   0x5 LB: > { %s23_s14 = sadd.s32 1, %s1013_s11  ;;  %s26_s15 = sadd.s32 1, %s1017_s12  ;;  %s1021_s13 = sphi %s1053_s13, %s14_s13   ;;  %s1017_s12 = sphi %s1051_s12, %s1529_s12   ;;  %s1013_s11 = sphi %s1049_s11, %s1528_s11   ;;  %s1009_s10 = sphi %s1047_s10, %s1527_s10   ;;  %s1005_s9 = sphi %s1045_s9, %s1526_s9   ;;  %s1001_s8 = sphi %s1043_s8, %s1525_s8   ;;  %s997_s7 = sphi %s1041_s7, %s1524_s7   ;;  %s993_s6 = sphi %s1039_s6, %s1523_s6  }
   0x6   : > { %p24_p0 = scmp.ge.s32.totalorder %s23_s14, 3  ;;  %s830_s16 = sadd.s32 4294967295, %s1021_s13  }
   0x7   : > { %p42_p1 = scmp.ne.s32.totalorder %s1001_s8, %s997_s7  ;;  %p43_p2 = scmp.eq.s32.totalorder %s1021_s13, 0 }
   0x8   : > { %s1531_s14 = smov (%p24_p0, %s23_s14), 0  ;;  %s1533_s15 = smov (!%p24_p0, %s26_s15), %s1017_s12 }
   0x9   : > { %s31_s17 = ssub.s32 %s1013_s11, %s1531_s14  ;;  %p28_p3 = scmp.ge.s32.totalorder %s1533_s15, 6 }
   0xa   : > { %p48_p4 = scmp.ne.s32.totalorder %s997_s7, %s993_s6  ;;  %p44_p5 = por %p43_p2, %p42_p1 }
   0xb   : > { %p49_p6 = scmp.eq.s32.totalorder %s830_s16, 0  ;;  %s1535_s15 = smov (%p28_p3, %s1533_s15), 0 }
   0xc   : > { %s30_s19 = ssub.s32 %s1017_s12, %s1535_s15  ;;  %s35_s21 = sadd.s32 1, %s1001_s8 }
   0xd   : > { %p1091_p7 = por %p49_p6, %p48_p4  ;;  %s32_s20 = sor.u32 %s31_s17, %s30_s19 }
   0xe   : > { %p33_p8 = scmp.eq.s32.totalorder %s32_s20, 0  ;;  %p833_p9 = scmp.ge.s32.totalorder %s1021_s13, 18 }
  0x10   : > { %s1099_s22 = scalar_select %p33_p8, %s1001_s8, %s35_s21  }
  0x11   : > { %94 = sbr.rel (%p833_p9) target bundleno = 62 (0x3e), region = 16 }
  0x18   : > { %97 = sbr.rel (!%p44_p5) target bundleno = 62 (0x3e), region = 20  ;;  %s98_s23 = sand.u32 (%p44_p5), 1, %s1001_s8  }
  0x19   : > { %s103_s24 = smul.u32 (%p44_p5), 5, %s1013_s11  ;;  %s1107_s29 = scalar_lea.sflag (%p44_p5), [#allocation4], %s98_s23 }
  0x1a   : > { %s852_s25 = smul.u32 (%p44_p5), 80, %s98_s23 }
  0x1b   : > { %s104_s26 = ssub.s32 (%p44_p5), 12, %s103_s24 }
  0x1c   : > { %p105_p10 = scmp.lt.s32.totalorder (%p44_p5), %s104_s26, 5  ;;  %s102_s30 = scalar_lea.vmem (%p44_p5), [#allocation3], %s852_s25 }
  0x1f   : > { %s1537_s26 = smov (!%p105_p10, %s104_s26), 5 }
  0x20   : > { %s1104_s27 = sshll.u32 %s1537_s26, 8 }
  0x21   : > { %s110_s28 = ssub.s32 1280, %s1104_s27 }
  0x22   : > { %111 = vsyncadd %s1107_s29, %s110_s28  ;;  %p836_p11 = scmp.ne.s32.totalorder %s1104_s27, 0  ;;  %s849_s2 = smul.u32 10, %s1013_s11 }
  0x23   : > { %s853_s3 = smul.u32 24, %s1017_s12  ;;  %s120_s4 = sshll.u32 %s102_s30, 4  ;;  %s1113_s4 = int_to_ptr.vmem [resolvable:$true] %s120_s4 }
  0x24   : > { %s931_s24 = scalar_lea.hbm %s1508_s0, 18432 }
  0x25   : > { %s115_s5 = sadd.s32 %s853_s3, %s849_s2 }
  0x26   : > { %s838_s6 = sshll.u32 %s115_s5, 7 }
  0x27   : > { %s1118_s19 = scalar_lea.hbm %s1508_s0, %s838_s6 }
  0x28   : > { %s927_s20 = scalar_lea.hbm %s1118_s19, %s1104_s27  ;;  %p932_p1 = scmp.lt.u32.totalorder %s1118_s19, %s1508_s0 }
  0x29   : > { %p928_p12 = scmp.ne.s32.totalorder %s1118_s19, %s927_s20  ;;  %p933_p2 = scmp.lt.u32.totalorder %s931_s24, %s927_s20 }
  0x2a   : > { %p935_p4 = scmp.lt.u32.totalorder %s927_s20, %s1118_s19 }
  0x2b   : > { %p929_p13 = pnand %p928_p12, %p836_p11  ;;  %p934_p3 = por %p933_p2, %p932_p1 }
  0x2d   : > { %p930_p0 = pneg %p929_p13  ;;  %p936_p5 = por %p935_p4, %p934_p3 }
  0x2f   : > { %p937_p6 = pnand %p936_p5, %p930_p0 }
  0x31   : > { %940 = shalt.err (!%p937_p6)
}
  0x32   : > { %s941_s28 = scalar_lea.vmem %s1113_s4, %s1104_s27  ;;  %s1023_s30 = smov [#allocation3]  }
  0x33   : > { %p942_p8 = scmp.ne.s32.totalorder %s1113_s4, %s941_s28  ;;  %s945_s2 = sshll.u32 %s1023_s30, 4  ;;  %s946_s2 = int_to_ptr.vmem [resolvable:$false] %s945_s2 }
  0x34   : > { %s947_s3 = scalar_lea.vmem %s946_s2, 2560  ;;  %p948_p12 = scmp.lt.s32.totalorder %s1113_s4, %s946_s2 }
  0x35   : > { %p943_p9 = pnand %p942_p8, %p836_p11  ;;  %p949_p13 = scmp.lt.s32.totalorder %s947_s3, %s941_s28 }
  0x37   : > { %p944_p10 = pneg %p943_p9  ;;  %p950_p1 = por %p949_p13, %p948_p12 }
  0x39   : > { %p951_p2 = pnand %p950_p1, %p944_p10 }
  0x3b   : > { %954 = shalt.err (!%p951_p2)
}
  0x3c   : > { %s1024_s5 = smov 128   ;;  %s1025_s6 = smov 8  }
  0x3d   : > { %126 = dma.hbm_to_vmem [thread:$0]  (%p836_p11), %s1118_s19, %s1104_s27, %s1113_s4, %s1107_s29, %s1024_s5, %s1024_s5, %s1025_s6  }
  0x3e PF: > { %p842_p0 = scmp.ge.s32.totalorder %s1021_s13, 1  ;;  %p128_p3 = scmp.lt.s32.totalorder %s1021_s13, 19 }
  0x40   : > { %p129_p4 = pnand %p842_p0, %p128_p3 }
  0x41   : > { %s134_s16 = sand.u32 (!%p129_p4), 1, %s997_s7  }
  0x42   : > { %132 = sbr.rel (%p129_p4) target bundleno = 723 (0x2d3), region = 24  ;;  %s135_s20 = scalar_lea.sflag (!%p129_p4), [#allocation4], %s134_s16 }
  0x43   : > { %s854_s17 = smul.u32 (!%p129_p4), 80, %s134_s16 }
  0x45   : > { %s1148_s21 = scalar_lea.vmem (!%p129_p4), [#allocation3], %s854_s17 }
  0x49   : > { %988 = dma.done.wait (%p1091_p7), %s135_s20, 1280  }
  0x4a   : > { %990 = vsyncadd (%p1091_p7), %s135_s20, 4294966016  ;;  %p161_p11 = scmp.lt.s32.totalorder %s1009_s10, 5  ;;  %p843_p5 = scmp.ne.s32.totalorder %s1005_s9, 0 }
  0x4b   : > { %vm168_vm0 = vcmask (!%p843_p5), 0   ;;  %v1026_v0 = vmov (!%p843_p5), 0.0  }
  0x4c   : > { %s1539_s10 = smov (!%p161_p11, %s1009_s10), 5  ;;  %167 = sbr.rel (%p843_p5) target bundleno = 83 (0x53), region = 32 }
  0x4d   : > { %s1159_s4 = scalar_lea.vmem %s1509_s1, %s1539_s10 }
  0x4e   : > { %169 = vst.msk [vmem:[%s1159_s4] sm:$0x1] (!%p843_p5), %vm168_vm0, %v1026_v0 }
  0x53 PF: > { %p844_p6 = scmp.le.s32.totalorder %s1005_s9, 0 }
  0x54   : > { %v175_v1 = vld [vmem:[#allocation2 + $0x50] sm:$0xff] (!%p844_p6)  ;;  %vm179_vm1 = vcmask (!%p844_p6), 195584   ;;  %v176_v2 = vld [vmem:[#allocation2 + $0x58] sm:$0xff] (!%p844_p6)  ;;  %v177_v3 = vld [vmem:[#allocation2 + $0x60] sm:$0xff] (!%p844_p6) }
  0x55   : > { %173 = sbr.rel (%p844_p6) target bundleno = 92 (0x5c), region = 36  ;;  %180 = vst.msk [vmem:[#allocation2] sm:$0xff] (!%p844_p6), %vm179_vm1, %v175_v1  ;;  %181 = vst.msk [vmem:[#allocation2 + $0x8] sm:$0xff] (!%p844_p6), %vm179_vm1, %v176_v2  ;;  %v178_v4 = vld [vmem:[#allocation2 + $0x68] sm:$0xff] (!%p844_p6) }
  0x56   : > { %182 = vst.msk [vmem:[#allocation2 + $0x10] sm:$0xff] (!%p844_p6), %vm179_vm1, %v177_v3  ;;  %183 = vst.msk [vmem:[#allocation2 + $0x18] sm:$0xff] (!%p844_p6), %vm179_vm1, %v178_v4 }
  0x5c PF: > { %v184_v7 = vld [vmem:[%s1148_s21] sm:$0xff]  ;;  %vm195_vm2 = vcmask 195584   ;;  %s1027_s10 = smov 2   ;;  %v185_v8 = vld [vmem:[%s1148_s21 + $0x8] sm:$0xff]  ;;  %v186_v9 = vld [vmem:[%s1148_s21 + $0x10] sm:$0xff]  ;;  %v363_v15 = vlaneseq  ;;  %vm257_vm8 = vcmask 1041408  }
  0x5d   : > { %v1164_v5 = vld [vmem:[#allocation2 + $0x10] sm:$0xff]  ;;  %v1166_v6 = vld [vmem:[#allocation2 + $0x18] sm:$0xff]  ;;  %196 = vst.msk [vmem:[#allocation2 + $0x20] sm:$0xff] %vm195_vm2, %v184_v7  ;;  %197 = vst.msk [vmem:[#allocation2 + $0x28] sm:$0xff] %vm195_vm2, %v185_v8  ;;  %vm474_vm9 = vcmask 195586   ;;  %s1028_s18 = smov 126  }
  0x5e   : > { %293 = vrot.lane.b32.xlu0 %v1164_v5, %s1027_s10  ;;  %v187_v10 = vld [vmem:[%s1148_s21 + $0x18] sm:$0xff]  ;;  %198 = vst.msk [vmem:[#allocation2 + $0x30] sm:$0xff] %vm195_vm2, %v186_v9  ;;  %v188_v11 = vld [vmem:[%s1148_s21 + $0x20] sm:$0xff]  ;;  %v189_v12 = vld [vmem:[%s1148_s21 + $0x28] sm:$0xff]  ;;  %v373_v18 = vand.u32 127, %v363_v15  ;;  %v1206_v22 = vshrl.u32 %v363_v15, 7 }
  0x5f   : > { %199 = vst.msk [vmem:[#allocation2 + $0x38] sm:$0xff] %vm195_vm2, %v187_v10  ;;  %v190_v13 = vld [vmem:[%s1148_s21 + $0x30] sm:$0xff]  ;;  %200 = vst.msk [vmem:[#allocation2 + $0x40] sm:$0xff] %vm195_vm2, %v188_v11  ;;  %v191_v14 = vld [vmem:[%s1148_s21 + $0x38] sm:$0xff]  ;;  %v258_v28 = vrot.slane %v1164_v5, 6  ;;  %v259_v32 = vrot.slane %v1166_v6, 6 }
  0x60   : > { %201 = vst.msk [vmem:[#allocation2 + $0x48] sm:$0xff] %vm195_vm2, %v189_v12  ;;  %202 = vst.msk [vmem:[#allocation2 + $0x50] sm:$0xff] %vm195_vm2, %v190_v13  ;;  %vm374_vm3 = vcmp.ge.s32.totalorder %v373_v18, 1  ;;  %vm375_vm4 = vcmp.le.s32.totalorder %v373_v18, 22  ;;  %vm366_vm6 = vcmp.ge.s32.totalorder %v1206_v22, 1  ;;  %v1250_v43 = vadd.s32 8, %v1206_v22 }
  0x61   : > { %203 = vst.msk [vmem:[#allocation2 + $0x58] sm:$0xff] %vm195_vm2, %v191_v14  ;;  %vm1210_vm5 = vmand %vm374_vm3, %vm375_vm4  ;;  %v283_v29 = vsub.f32 %v1164_v5, %v258_v28  ;;  %v260_v39 = vsel %vm257_vm8, %v258_v28, %v259_v32  ;;  %v193_v32 = vld [vmem:[%s1148_s21 + $0x48] sm:$0xff]  ;;  %vm515_vm12 = vcmask 1045504   ;;  %vm636_vm13 = vcmask 179200   ;;  %s707_s19 = smul.u32 5, %s1005_s9 }
  0x62   : > { %295 = vrot.lane.b32.xlu0 %v1166_v6, %s1027_s10  ;;  %vm1221_vm7 = vmand %vm366_vm6, %vm1210_vm5  ;;  %v284_v45 = vsub.f32 %v1166_v6, %v260_v39  ;;  %vm369_vm10 = vcmp.le.s32.totalorder %v1250_v43, 14  ;;  %205 = vst.msk [vmem:[#allocation2 + $0x68] sm:$0xff] %vm195_vm2, %v193_v32  ;;  %vm735_vm1 = vcmask 0  }
  0x63   : > { %v343_v33 = vand.u32 2147483647, %v283_v29  ;;  %vm1264_vm11 = vmand %vm369_vm10, %vm1210_vm5  ;;  %s845_s23 = sadd.s32 4294967295, %s707_s19 }
  0x64   : > { %v1188_v16 = vld [vmem:[#allocation2 + $0x20] sm:$0xff]  ;;  %v1194_v19 = vld [vmem:[#allocation2 + $0x28] sm:$0xff]  ;;  %v344_v50 = vand.u32 2147483647, %v284_v45 }
  0x65   : > { %297 = vrot.lane.b32.xlu1 %v1188_v16, %s1027_s10  ;;  %v1192_v17 = vld [vmem:[#allocation2 + $0x30] sm:$0xff]  ;;  %v261_v30 = vrot.slane %v1188_v16, 6  ;;  %v262_v31 = vrot.slane %v1194_v19, 6  ;;  %v464_v38 = vsel %vm1210_vm5, %v343_v33, 0.0 }
  0x66   : > { %301 = vrot.lane.b32.xlu0 %v1192_v17, %s1027_s10  ;;  %v1198_v20 = vld [vmem:[#allocation2 + $0x40] sm:$0xff]  ;;  %v1202_v21 = vld [vmem:[#allocation2 + $0x38] sm:$0xff]  ;;  %v264_v37 = vrot.slane %v1192_v17, 6  ;;  %v475_v44 = vsel %vm474_vm9, %v464_v38, 0.0  ;;  %v465_v57 = vsel %vm1210_vm5, %v344_v50, 0.0 }
  0x67   : > { %v1208_v23 = vld [vmem:[#allocation2 + $0x50] sm:$0xff]  ;;  %v1225_v26 = vld [vmem:[#allocation2 + $0x48] sm:$0xff]  ;;  %v285_v34 = vsub.f32 %v1188_v16, %v261_v30  ;;  %v265_v35 = vrot.slane %v1202_v21, 6  ;;  %v263_v36 = vsel %vm257_vm8, %v261_v30, %v262_v31  ;;  %v267_v56 = vrot.slane %v1198_v20, 6 }
  0x68   : > { %v1231_v27 = vld [vmem:[#allocation2 + $0x58] sm:$0xff]  ;;  %v286_v41 = vsub.f32 %v1194_v19, %v263_v36  ;;  %v268_v49 = vrot.slane %v1225_v26, 6  ;;  %v287_v54 = vsub.f32 %v1192_v17, %v264_v37  ;;  %v478_v2 = vsel %vm195_vm2, %v465_v57, 0.0  ;;  %v192_v33 = vld [vmem:[%s1148_s21 + $0x40] sm:$0xff] }
  0x69   : > { %299 = vrot.lane.b32.xlu1 %v1194_v19, %s1027_s10  ;;  %v345_v40 = vand.u32 2147483647, %v285_v34  ;;  %v266_v42 = vsel %vm257_vm8, %v264_v37, %v265_v35  ;;  %v289_v62 = vsub.f32 %v1198_v20, %v267_v56  ;;  %v270_v10 = vrot.slane %v1208_v23, 6  ;;  %204 = vst.msk [vmem:[#allocation2 + $0x60] sm:$0xff] %vm195_vm2, %v192_v33 }
  0x6a   : > { %305 = vrot.lane.b32.xlu0 %v1198_v20, %s1027_s10  ;;  %v346_v47 = vand.u32 2147483647, %v286_v41  ;;  %v288_v48 = vsub.f32 %v1202_v21, %v266_v42  ;;  %v269_v59 = vsel %vm257_vm8, %v267_v56, %v268_v49  ;;  %v347_v60 = vand.u32 2147483647, %v287_v54 }
  0x6b   : > { %v466_v46 = vsel %vm1210_vm5, %v345_v40, 0.0  ;;  %v290_v63 = vsub.f32 %v1225_v26, %v269_v59  ;;  %v349_v0 = vand.u32 2147483647, %v289_v62  ;;  %v271_v11 = vrot.slane %v1231_v27, 6 }
  0x6c   : > { %v481_v51 = vsel %vm474_vm9, %v466_v46, 0.0  ;;  %v467_v53 = vsel %vm1210_vm5, %v346_v47, 0.0  ;;  %v348_v55 = vand.u32 2147483647, %v288_v48  ;;  %v468_v4 = vsel %vm1210_vm5, %v347_v60, 0.0 }
  0x6d   : > { %303 = vrot.lane.b32.xlu1 %v1202_v21, %s1027_s10  ;;  %v484_v58 = vsel %vm195_vm2, %v467_v53, 0.0  ;;  %v1280_v1 = vand.u32 2147483647, %v290_v63  ;;  %v470_v7 = vsel %vm1210_vm5, %v349_v0, 0.0  ;;  %v487_v12 = vsel %vm474_vm9, %v468_v4, 0.0 }
  0x6e   : > { %309 = vrot.lane.b32.xlu0 %v1208_v23, %s1027_s10  ;;  %v469_v61 = vsel %vm1210_vm5, %v348_v55, 0.0  ;;  %v1292_v9 = vsel %vm474_vm9, %v470_v7, 0.0  ;;  %v272_v13 = vsel %vm257_vm8, %v270_v10, %v271_v11  ;;  %v291_v14 = vsub.f32 %v1208_v23, %v270_v10 }
  0x6f   : > { %v490_v3 = vsel %vm195_vm2, %v469_v61, 0.0  ;;  %v471_v8 = vsel %vm1210_vm5, %v1280_v1, 0.0  ;;  %v292_v15 = vsub.f32 %v1231_v27, %v272_v13  ;;  %v240_v33 = vsub.f32 %v1202_v21, %v1166_v6 }
  0x70   : > { %v351_v18 = vand.u32 2147483647, %v291_v14 }
  0x71   : > { %307 = vrot.lane.b32.xlu1 %v1225_v26, %s1027_s10  ;;  %v1300_v28 = vand.u32 2147483647, %v292_v15 }
  0x72   : > { %v472_v29 = vsel %vm1210_vm5, %v351_v18, 0.0 }
  0x73   : > { %v473_v30 = vsel %vm1210_vm5, %v1300_v28, 0.0  ;;  %v1308_v31 = vsel %vm474_vm9, %v472_v29, 0.0  ;;  %v207_v29 = vld [vmem:[#allocation2 + $0x8] sm:$0xff] }
  0x74   : > { %v238_v22 = vsub.f32 %v1194_v19, %v207_v29 }
  0x75   : > { %311 = vrot.lane.b32.xlu1 %v1231_v27, %s1027_s10 }
  0x76   : > { %v334_v32 = vand.u32 2147483647, %v238_v22 }
  0x8d   : > { %476 = vadd.xlane.f32.xlu0 %v475_v44 }
  0x91   : > { %482 = vadd.xlane.f32.xlu0 %v481_v51 }
  0x95   : > { %485 = vadd.xlane.f32.xlu0 %v484_v58 }
  0x99   : > { %479 = vadd.xlane.f32.xlu1 %v478_v2  ;;  %491 = vadd.xlane.f32.xlu0 %v490_v3 }
  0x9d   : > { %488 = vadd.xlane.f32.xlu1 %v487_v12 }
  0xd0   : > { %v294_v34 = vpop.permute.xlu0 %293 }
  0xd1   : > { %v323_v35 = vsub.f32 %v1164_v5, %v294_v34  ;;  %v206_v34 = vld [vmem:[#allocation2] sm:$0xff] }
  0xd3   : > { %v353_v36 = vand.u32 2147483647, %v323_v35  ;;  %v390_v35 = vsel %vm1264_vm11, %v334_v32, 0.0 }
  0xd4   : > { %v296_v37 = vpop.permute.xlu0 %295 }
  0xd5   : > { %v324_v38 = vsub.f32 %v1166_v6, %v296_v37  ;;  %v586_v39 = vsel %vm366_vm6, %v353_v36, 0.0  ;;  %v336_v36 = vand.u32 2147483647, %v240_v33  ;;  %v237_v37 = vsub.f32 %v1188_v16, %v206_v34 }
  0xd6   : > { %606 = vrot.lane.b32.xlu0 %v586_v39, %s1028_s18  ;;  %v242_v39 = vsub.f32 %v1225_v26, %v1194_v19 }
  0xd7   : > { %v354_v40 = vand.u32 2147483647, %v324_v38  ;;  %v298_v41 = vpop.permute.xlu1 %297  ;;  %v402_v38 = vsel %vm195_vm2, %v390_v35, 0.0  ;;  %v392_v43 = vsel %vm1264_vm11, %v336_v36, 0.0 }
  0xd8   : > { %v325_v42 = vsub.f32 %v1188_v16, %v298_v41  ;;  %v302_v45 = vpop.permute.xlu0 %301  ;;  %v239_v41 = vsub.f32 %v1192_v17, %v1164_v5  ;;  %v408_v6 = vsel %vm195_vm2, %v392_v43, 0.0 }
  0xd9   : > { %v587_v44 = vsel %vm369_vm10, %v354_v40, 0.0  ;;  %v327_v46 = vsub.f32 %v1192_v17, %v302_v45  ;;  %v333_v40 = vand.u32 2147483647, %v237_v37 }
  0xda   : > { %608 = vrot.lane.b32.xlu1 %v587_v44, %s1028_s18  ;;  %v355_v47 = vand.u32 2147483647, %v325_v42  ;;  %v338_v42 = vand.u32 2147483647, %v242_v39  ;;  %v335_v45 = vand.u32 2147483647, %v239_v41 }
  0xdb   : > { %v300_v48 = vpop.permute.xlu1 %299  ;;  %v357_v49 = vand.u32 2147483647, %v327_v46  ;;  %v389_v44 = vsel %vm1221_vm7, %v333_v40, 0.0  ;;  %v496_v46 = vsel %vm195_vm2, %v471_v8, 0.0 }
  0xdc   : > { %v326_v50 = vsub.f32 %v1194_v19, %v300_v48  ;;  %v588_v51 = vsel %vm366_vm6, %v355_v47, 0.0  ;;  %v306_v53 = vpop.permute.xlu0 %305  ;;  %v399_v19 = vsel %vm195_vm2, %v389_v44, 0.0  ;;  %v394_v5 = vsel %vm1264_vm11, %v338_v42, 0.0 }
  0xdd   : > { %610 = vrot.lane.b32.xlu0 %v588_v51, %s1028_s18  ;;  %v329_v54 = vsub.f32 %v1198_v20, %v306_v53  ;;  %v590_v56 = vsel %vm366_vm6, %v357_v49, 0.0  ;;  %v244_v47 = vsub.f32 %v1231_v27, %v1202_v21  ;;  %v391_v48 = vsel %vm1221_vm7, %v335_v45, 0.0 }
  0xde   : > { %v356_v55 = vand.u32 2147483647, %v326_v50  ;;  %v241_v49 = vsub.f32 %v1198_v20, %v1188_v16  ;;  %v236_v50 = vld [vmem:[#allocation2 + $0x68] sm:$0xff]  ;;  %v414_v1 = vsel %vm195_vm2, %v394_v5, 0.0  ;;  %v405_v8 = vsel %vm195_vm2, %v391_v48, 0.0 }
  0xdf   : > { %v304_v57 = vpop.permute.xlu1 %303  ;;  %v359_v58 = vand.u32 2147483647, %v329_v54  ;;  %v340_v51 = vand.u32 2147483647, %v244_v47  ;;  %v246_v53 = vsub.f32 %v236_v50, %v1225_v26 }
  0xe0   : > { %v328_v59 = vsub.f32 %v1202_v21, %v304_v57  ;;  %v589_v60 = vsel %vm369_vm10, %v356_v55, 0.0  ;;  %v310_v61 = vpop.permute.xlu0 %309  ;;  %v337_v54 = vand.u32 2147483647, %v241_v49  ;;  %v502_v21 = vsel %vm195_vm2, %v473_v30, 0.0 }
  0xe1   : > { %612 = vrot.lane.b32.xlu1 %v589_v60, %s1028_s18  ;;  %614 = vrot.lane.b32.xlu0 %v590_v56, %s1028_s18  ;;  %v331_v62 = vsub.f32 %v1208_v23, %v310_v61  ;;  %v592_v0 = vsel %vm366_vm6, %v359_v58, 0.0  ;;  %v396_v16 = vsel %vm1264_vm11, %v340_v51, 0.0  ;;  %v243_v56 = vsub.f32 %v1208_v23, %v1192_v17 }
  0xe2   : > { %v358_v63 = vand.u32 2147483647, %v328_v59  ;;  %v393_v55 = vsel %vm1221_vm7, %v337_v54, 0.0  ;;  %v420_v24 = vsel %vm195_vm2, %v396_v16, 0.0 }
  0xe3   : > { %v308_v2 = vpop.permute.xlu1 %307  ;;  %v361_v3 = vand.u32 2147483647, %v331_v62  ;;  %v411_v28 = vsel %vm195_vm2, %v393_v55, 0.0  ;;  %v339_v58 = vand.u32 2147483647, %v243_v56 }
  0xe4   : > { %v330_v4 = vsub.f32 %v1225_v26, %v308_v2  ;;  %v591_v7 = vsel %vm369_vm10, %v358_v63, 0.0  ;;  %v235_v26 = vld [vmem:[#allocation2 + $0x60] sm:$0xff] }
  0xe5   : > { %616 = vrot.lane.b32.xlu1 %v591_v7, %s1028_s18  ;;  %618 = vrot.lane.b32.xlu0 %v592_v0, %s1028_s18  ;;  %v594_v11 = vsel %vm366_vm6, %v361_v3, 0.0  ;;  %v245_v59 = vsub.f32 %v235_v26, %v1198_v20  ;;  %v395_v23 = vsel %vm1221_vm7, %v339_v58, 0.0 }
  0xe6   : > { %v360_v10 = vand.u32 2147483647, %v330_v4  ;;  %v417_v62 = vsel %vm195_vm2, %v395_v23, 0.0 }
  0xe7   : > { %v312_v12 = vpop.permute.xlu1 %311 }
  0xe8   : > { %v332_v13 = vsub.f32 %v1231_v27, %v312_v12  ;;  %v593_v14 = vsel %vm369_vm10, %v360_v10, 0.0  ;;  %v342_v27 = vand.u32 2147483647, %v246_v53 }
  0xe9   : > { %620 = vrot.lane.b32.xlu1 %v593_v14, %s1028_s18  ;;  %622 = vrot.lane.b32.xlu0 %v594_v11, %s1028_s18 }
  0xea   : > { %v362_v15 = vand.u32 2147483647, %v332_v13  ;;  %v398_v30 = vsel %vm1264_vm11, %v342_v27, 0.0 }
  0xeb   : > { %v426_v60 = vsel %vm195_vm2, %v398_v30, 0.0 }
  0xec   : > { %v595_v18 = vsel %vm369_vm10, %v362_v15, 0.0 }
  0xed   : > { %624 = vrot.lane.b32.xlu1 %v595_v18, %s1028_s18 }
 0x108   : > { %403 = vadd.xlane.f32.xlu0 %v402_v38 }
 0x10c   : > { %409 = vadd.xlane.f32.xlu0 %v408_v6 }
 0x110   : > { %497 = vadd.xlane.f32.xlu0 %v496_v46 }
 0x111   : > { %400 = vadd.xlane.f32.xlu1 %v399_v19 }
 0x114   : > { %415 = vadd.xlane.f32.xlu0 %v414_v1 }
 0x115   : > { %406 = vadd.xlane.f32.xlu1 %v405_v8 }
 0x118   : > { %503 = vadd.xlane.f32.xlu0 %v502_v21 }
 0x119   : > { %494 = vadd.xlane.f32.xlu1 %v1292_v9  ;;  %v341_v9 = vand.u32 2147483647, %v245_v59 }
 0x11a   : > { %v477_v57 = vpop.xlane.xlu0 %476 }
 0x11b   : > { %v397_v20 = vsel %vm1221_vm7, %v341_v9, 0.0  ;;  %v516_v0 = vrot.slane %v477_v57, 2 }
 0x11c   : > { %421 = vadd.xlane.f32.xlu0 %v420_v24 }
 0x11d   : > { %412 = vadd.xlane.f32.xlu1 %v411_v28 }
 0x11e   : > { %v483_v17 = vpop.xlane.xlu0 %482 }
 0x11f   : > { %v519_v61 = vrot.slane %v483_v17, 2 }
 0x120   : > { %427 = vadd.xlane.f32.xlu0 %v426_v60 }
 0x121   : > { %500 = vadd.xlane.f32.xlu1 %v1308_v31  ;;  %v423_v31 = vsel %vm195_vm2, %v397_v20, 0.0 }
 0x122   : > { %v486_v52 = vpop.xlane.xlu0 %485 }
 0x123   : > { %v520_v63 = vrot.slane %v486_v52, 2 }
 0x125   : > { %418 = vadd.xlane.f32.xlu1 %v417_v62  ;;  %v521_v2 = vsel %vm515_vm12, %v519_v61, %v520_v63  ;;  %v549_v3 = vsel %vm515_vm12, %v520_v63, 0.0 }
 0x126   : > { %v480_v4 = vpop.xlane.xlu1 %479  ;;  %v1413_v7 = vadd.f32 %v549_v3, %v521_v2  ;;  %v492_v10 = vpop.xlane.xlu0 %491 }
 0x127   : > { %v517_v11 = vrot.slane %v480_v4, 2  ;;  %v523_v12 = vrot.slane %v492_v10, 2 }
 0x128   : > { %v551_v26 = vrot.slane %v1413_v7, 4 }
 0x129   : > { %v518_v13 = vsel %vm515_vm12, %v516_v0, %v517_v11  ;;  %v541_v25 = vsel %vm515_vm12, %v517_v11, 0.0  ;;  %424 = vadd.xlane.f32.xlu1 %v423_v31  ;;  %v557_v29 = vsel %vm515_vm12, %v523_v12, 0.0 }
 0x12a   : > { %v542_v14 = vadd.f32 %v541_v25, %v518_v13  ;;  %v489_v15 = vpop.xlane.xlu1 %488  ;;  %v552_v23 = vadd.f32 %v551_v26, %v1413_v7 }
 0x12b   : > { %v522_v18 = vrot.slane %v489_v15, 2 }
 0x12c   : > { %v543_v24 = vrot.slane %v542_v14, 4  ;;  %v553_v4 = vrot.slane %v552_v23, 2 }
 0x12d   : > { %v524_v22 = vsel %vm515_vm12, %v522_v18, %v523_v12 }
 0x12e   : > { %v558_v32 = vadd.f32 %v557_v29, %v524_v22  ;;  %v544_v9 = vadd.f32 %v543_v24, %v542_v14  ;;  %v554_v22 = vadd.f32 %v553_v4, %v552_v23 }
 0x130   : > { %v559_v28 = vrot.slane %v558_v32, 4  ;;  %v545_v11 = vrot.slane %v544_v9, 2 }
 0x132   : > { %v560_v61 = vadd.f32 %v559_v28, %v558_v32 }
 0x134   : > { %v561_v12 = vrot.slane %v560_v61, 2 }
 0x148   : > { %v607_v33 = vpop.permute.xlu0 %606 }
 0x149   : > { %v637_v34 = vsel %vm636_vm13, %v607_v33, 0.0 }
 0x14a   : > { %638 = vadd.xlane.f32.xlu1 %v637_v34 }
 0x14c   : > { %v609_v35 = vpop.permute.xlu1 %608 }
 0x14d   : > { %v640_v36 = vsel %vm636_vm13, %v609_v35, 0.0  ;;  %v546_v35 = vadd.f32 %v545_v11, %v544_v9 }
 0x14e   : > { %641 = vadd.xlane.f32.xlu0 %v640_v36  ;;  %v562_v36 = vadd.f32 %v561_v12, %v560_v61 }
 0x14f   : > { %v611_v37 = vpop.permute.xlu0 %610 }
 0x150   : > { %v643_v38 = vsel %vm636_vm13, %v611_v37, 0.0 }
 0x151   : > { %644 = vadd.xlane.f32.xlu1 %v643_v38 }
 0x153   : > { %v613_v43 = vpop.permute.xlu1 %612  ;;  %v615_v39 = vpop.permute.xlu0 %614 }
 0x154   : > { %v646_v40 = vsel %vm636_vm13, %v613_v43, 0.0  ;;  %v649_v41 = vsel %vm636_vm13, %v615_v39, 0.0 }
 0x155   : > { %647 = vadd.xlane.f32.xlu0 %v646_v40  ;;  %650 = vadd.xlane.f32.xlu1 %v649_v41 }
 0x157   : > { %v617_v6 = vpop.permute.xlu1 %616  ;;  %v619_v42 = vpop.permute.xlu0 %618 }
 0x158   : > { %v652_v44 = vsel %vm636_vm13, %v617_v6, 0.0  ;;  %v655_v45 = vsel %vm636_vm13, %v619_v42, 0.0 }
 0x159   : > { %653 = vadd.xlane.f32.xlu0 %v652_v44  ;;  %656 = vadd.xlane.f32.xlu1 %v655_v45  ;;  %v555_v45 = vrot.slane %v554_v22, 1 }
 0x15b   : > { %v621_v46 = vpop.permute.xlu1 %620  ;;  %v623_v19 = vpop.permute.xlu0 %622 }
 0x15c   : > { %v658_v5 = vsel %vm636_vm13, %v621_v46, 0.0  ;;  %v661_v47 = vsel %vm636_vm13, %v623_v19, 0.0  ;;  %v547_v19 = vrot.slane %v546_v35, 1 }
 0x15d   : > { %659 = vadd.xlane.f32.xlu0 %v658_v5  ;;  %662 = vadd.xlane.f32.xlu1 %v661_v47  ;;  %v563_v5 = vrot.slane %v562_v36, 1 }
 0x15e   : > { %v548_v26 = vadd.f32 %v547_v19, %v546_v35 }
 0x15f   : > { %v625_v48 = vpop.permute.xlu1 %624  ;;  %v1439_v24 = vadd.f32 %v563_v5, %v562_v36 }
 0x160   : > { %v664_v49 = vsel %vm636_vm13, %v625_v48, 0.0 }
 0x161   : > { %665 = vadd.xlane.f32.xlu0 %v664_v49 }
 0x195   : > { %v404_v1 = vpop.xlane.xlu0 %403 }
 0x199   : > { %v410_v51 = vpop.xlane.xlu0 %409 }
 0x19d   : > { %v498_v54 = vpop.xlane.xlu0 %497 }
 0x19e   : > { %v401_v50 = vpop.xlane.xlu1 %400  ;;  %v526_v60 = vrot.slane %v498_v54, 2 }
 0x19f   : > { %v429_v56 = vadd.f32 %v404_v1, %v401_v50 }
 0x1a0   : > { %v565_v0 = vsel %vm515_vm12, %v526_v60, 0.0 }
 0x1a1   : > { %v416_v16 = vpop.xlane.xlu0 %415  ;;  %v430_v30 = vrot.slane %v429_v56, 4 }
 0x1a2   : > { %v407_v8 = vpop.xlane.xlu1 %406 }
 0x1a3   : > { %v436_v58 = vadd.f32 %v410_v51, %v407_v8  ;;  %v431_v52 = vadd.f32 %v430_v30, %v429_v56  ;;  %v1437_v56 = vstv %s845_s23 }
 0x1a4   : > { %vm714_vm14 = vcmp.ge.s32.totalorder %v1437_v56, 1  ;;  %vm719_vm15 = vcmp.le.s32.totalorder %v1437_v56, 10 }
 0x1a5   : > { %v504_v55 = vpop.xlane.xlu0 %503  ;;  %v437_v63 = vrot.slane %v436_v58, 4  ;;  %v432_v7 = vrot.slane %v431_v52, 2  ;;  %vm1450_vm4 = vmand %vm714_vm14, %vm719_vm15 }
 0x1a6   : > { %v495_v53 = vpop.xlane.xlu1 %494  ;;  %v529_v31 = vrot.slane %v504_v55, 2 }
 0x1a7   : > { %v525_v59 = vrot.slane %v495_v53, 2  ;;  %v438_v14 = vadd.f32 %v437_v63, %v436_v58  ;;  %v433_v38 = vadd.f32 %v432_v7, %v431_v52 }
 0x1a8   : > { %v573_v32 = vsel %vm515_vm12, %v529_v31, 0.0 }
 0x1a9   : > { %v422_v17 = vpop.xlane.xlu0 %421  ;;  %v527_v20 = vsel %vm515_vm12, %v525_v59, %v526_v60  ;;  %v439_v43 = vrot.slane %v438_v14, 2  ;;  %v434_v48 = vrot.slane %v433_v38, 1 }
 0x1aa   : > { %v413_v21 = vpop.xlane.xlu1 %412  ;;  %v566_v13 = vadd.f32 %v565_v0, %v527_v20 }
 0x1ab   : > { %v443_v2 = vadd.f32 %v416_v16, %v413_v21  ;;  %v440_v49 = vadd.f32 %v439_v43, %v438_v14  ;;  %v556_v16 = vadd.f32 %v555_v45, %v554_v22  ;;  %v435_v30 = vadd.f32 %v434_v48, %v433_v38 }
 0x1ac   : > { %v567_v37 = vrot.slane %v566_v13, 4 }
 0x1ad   : > { %v428_v3 = vpop.xlane.xlu0 %427  ;;  %v444_v15 = vrot.slane %v443_v2, 4  ;;  %v441_v58 = vrot.slane %v440_v49, 1  ;;  %v581_v4 = vadd.f32 %v548_v26, %v435_v30 }
 0x1ae   : > { %v501_v27 = vpop.xlane.xlu1 %500  ;;  %v568_v47 = vadd.f32 %v567_v37, %v566_v13 }
 0x1af   : > { %v528_v10 = vrot.slane %v501_v27, 2  ;;  %v445_v40 = vadd.f32 %v444_v15, %v443_v2 }
 0x1b0   : > { %v569_v28 = vrot.slane %v568_v47, 2 }
 0x1b1   : > { %v530_v33 = vsel %vm515_vm12, %v528_v10, %v529_v31  ;;  %v446_v1 = vrot.slane %v445_v40, 2  ;;  %v442_v31 = vadd.f32 %v441_v58, %v440_v49 }
 0x1b2   : > { %v419_v57 = vpop.xlane.xlu1 %418  ;;  %v574_v41 = vadd.f32 %v573_v32, %v530_v33  ;;  %v570_v0 = vadd.f32 %v569_v28, %v568_v47  ;;  %v713_v28 = vadd.s32 4, %v1437_v56 }
 0x1b3   : > { %v450_v18 = vadd.f32 %v422_v17, %v419_v57  ;;  %v710_v57 = vadd.s32 1, %v1437_v56  ;;  %v447_v17 = vadd.f32 %v446_v1, %v445_v40  ;;  %v582_v35 = vadd.f32 %v556_v16, %v442_v31 }
 0x1b4   : > { %v575_v8 = vrot.slane %v574_v41, 4  ;;  %v571_v22 = vrot.slane %v570_v0, 1  ;;  %vm718_vm10 = vcmp.ge.s32.totalorder %v713_v28, 1  ;;  %vm723_vm12 = vcmp.le.s32.totalorder %v713_v28, 10 }
 0x1b5   : > { %v451_v6 = vrot.slane %v450_v18, 4  ;;  %vm715_vm0 = vcmp.ge.s32.totalorder %v710_v57, 1  ;;  %v448_v12 = vrot.slane %v447_v17, 1  ;;  %vm720_vm2 = vcmp.le.s32.totalorder %v710_v57, 10  ;;  %vm728_vm13 = vmand %vm718_vm10, %vm723_vm12 }
 0x1b6   : > { %v425_v62 = vpop.xlane.xlu1 %424  ;;  %v576_v23 = vadd.f32 %v575_v8, %v574_v41  ;;  %v572_v5 = vadd.f32 %v571_v22, %v570_v0  ;;  %vm1456_vm7 = vmand %vm715_vm0, %vm720_vm2 }
 0x1b7   : > { %v457_v42 = vadd.f32 %v428_v3, %v425_v62  ;;  %v452_v51 = vadd.f32 %v451_v6, %v450_v18  ;;  %v711_v3 = vadd.s32 2, %v1437_v56 }
 0x1b8   : > { %v577_v13 = vrot.slane %v576_v23, 2 }
 0x1b9   : > { %v458_v53 = vrot.slane %v457_v42, 4  ;;  %v453_v9 = vrot.slane %v452_v51, 2  ;;  %vm716_vm3 = vcmp.ge.s32.totalorder %v711_v3, 1  ;;  %vm721_vm6 = vcmp.le.s32.totalorder %v711_v3, 10 }
 0x1ba   : > { %v578_v40 = vadd.f32 %v577_v13, %v576_v23  ;;  %vm1468_vm9 = vmand %vm716_vm3, %vm721_vm6 }
 0x1bb   : > { %v459_v61 = vadd.f32 %v458_v53, %v457_v42 }
 0x1bd   : > { %v460_v7 = vrot.slane %v459_v61, 2 }
 0x1bf   : > { %v461_v6 = vadd.f32 %v460_v7, %v459_v61 }
 0x1d7   : > { %v639_v25 = vpop.xlane.xlu1 %638 }
 0x1db   : > { %v642_v29 = vpop.xlane.xlu0 %641 }
 0x1dc   : > { %v667_v34 = vadd.f32 %v642_v29, %v639_v25  ;;  %v454_v25 = vadd.f32 %v453_v9, %v452_v51 }
 0x1de   : > { %v668_v39 = vrot.slane %v667_v34, 4  ;;  %v645_v44 = vpop.xlane.xlu1 %644  ;;  %v455_v41 = vrot.slane %v454_v25, 1 }
 0x1e0   : > { %v669_v46 = vadd.f32 %v668_v39, %v667_v34  ;;  %v712_v34 = vadd.s32 3, %v1437_v56  ;;  %v449_v39 = vadd.f32 %v448_v12, %v447_v17  ;;  %v456_v53 = vadd.f32 %v455_v41, %v454_v25 }
 0x1e2   : > { %v670_v50 = vrot.slane %v669_v46, 2  ;;  %v648_v54 = vpop.xlane.xlu0 %647  ;;  %v651_v21 = vpop.xlane.xlu1 %650  ;;  %vm717_vm5 = vcmp.ge.s32.totalorder %v712_v34, 1  ;;  %v583_v51 = vadd.f32 %v1439_v24, %v449_v39  ;;  %vm722_vm8 = vcmp.le.s32.totalorder %v712_v34, 10  ;;  %v729_v34 = vld [vmem:[%s1159_s4] sm:$0x1] }
 0x1e3   : > { %v674_v55 = vadd.f32 %v648_v54, %v645_v44  ;;  %v462_v54 = vrot.slane %v461_v6, 1  ;;  %v584_v23 = vadd.f32 %v572_v5, %v456_v53  ;;  %vm727_vm11 = vmand %vm717_vm5, %vm722_vm8 }
 0x1e4   : > { %v671_v27 = vadd.f32 %v670_v50, %v669_v46 }
 0x1e5   : > { %v675_v60 = vrot.slane %v674_v55, 4  ;;  %v463_v61 = vadd.f32 %v462_v54, %v461_v6 }
 0x1e6   : > { %v672_v59 = vrot.slane %v671_v27, 1  ;;  %v654_v62 = vpop.xlane.xlu0 %653  ;;  %v657_v52 = vpop.xlane.xlu1 %656 }
 0x1e7   : > { %v676_v63 = vadd.f32 %v675_v60, %v674_v55  ;;  %v681_v20 = vadd.f32 %v654_v62, %v651_v21  ;;  %v579_v21 = vrot.slane %v578_v40, 1 }
 0x1e8   : > { %v673_v2 = vadd.f32 %v672_v59, %v671_v27 }
 0x1e9   : > { %v677_v10 = vrot.slane %v676_v63, 2  ;;  %v682_v11 = vrot.slane %v681_v20, 4  ;;  %v580_v9 = vadd.f32 %v579_v21, %v578_v40 }
 0x1ea   : > { %v660_v14 = vpop.xlane.xlu0 %659  ;;  %v702_v32 = vadd.f32 %v673_v2, %v581_v4  ;;  %v663_v33 = vpop.xlane.xlu1 %662 }
 0x1eb   : > { %v678_v15 = vadd.f32 %v677_v10, %v676_v63  ;;  %v683_v18 = vadd.f32 %v682_v11, %v681_v20  ;;  %v688_v29 = vadd.f32 %v660_v14, %v657_v52  ;;  %v585_v4 = vadd.f32 %v580_v9, %v463_v61 }
 0x1ec   : > { %v730_v48 = vsel %vm1450_vm4, %v702_v32, 0.0 }
 0x1ed   : > { %v679_v36 = vrot.slane %v678_v15, 1  ;;  %v684_v37 = vrot.slane %v683_v18, 2  ;;  %v689_v38 = vrot.slane %v688_v29, 4  ;;  %v736_v24 = vsel %vm735_vm1, %v730_v48, 0.0 }
 0x1ee   : > { %v666_v42 = vpop.xlane.xlu0 %665 }
 0x1ef   : > { %v680_v44 = vadd.f32 %v679_v36, %v678_v15  ;;  %v685_v45 = vadd.f32 %v684_v37, %v683_v18  ;;  %v690_v46 = vadd.f32 %v689_v38, %v688_v29  ;;  %v695_v19 = vadd.f32 %v666_v42, %v663_v33 }
 0x1f1   : > { %v703_v49 = vadd.f32 %v680_v44, %v582_v35  ;;  %v686_v50 = vrot.slane %v685_v45, 1  ;;  %v691_v1 = vrot.slane %v690_v46, 2  ;;  %v696_v8 = vrot.slane %v695_v19, 4 }
 0x1f3   : > { %v687_v16 = vadd.f32 %v686_v50, %v685_v45  ;;  %v692_v27 = vadd.f32 %v691_v1, %v690_v46  ;;  %v697_v55 = vadd.f32 %v696_v8, %v695_v19  ;;  %v731_v26 = vsel %vm1456_vm7, %v703_v49, 0.0 }
 0x1f4   : > { %v737_v30 = vsel %vm735_vm1, %v731_v26, 0.0 }
 0x1f5   : > { %v704_v58 = vadd.f32 %v687_v16, %v583_v51  ;;  %v693_v59 = vrot.slane %v692_v27, 1  ;;  %v698_v60 = vrot.slane %v697_v55, 2  ;;  %v738_v17 = vadd.f32 %v737_v30, %v736_v24 }
 0x1f7   : > { %v694_v62 = vadd.f32 %v693_v59, %v692_v27  ;;  %v699_v56 = vadd.f32 %v698_v60, %v697_v55  ;;  %v732_v52 = vsel %vm1468_vm9, %v704_v58, 0.0 }
 0x1f8   : > { %v739_v63 = vsel %vm735_vm1, %v732_v52, 0.0 }
 0x1f9   : > { %v700_v20 = vrot.slane %v699_v56, 1  ;;  %v705_v0 = vadd.f32 %v694_v62, %v584_v23  ;;  %v740_v2 = vadd.f32 %v739_v63, %v738_v17 }
 0x1fb   : > { %v701_v3 = vadd.f32 %v700_v20, %v699_v56  ;;  %v733_v31 = vsel %vm727_vm11, %v705_v0, 0.0 }
 0x1fc   : > { %v741_v10 = vsel %vm735_vm1, %v733_v31, 0.0 }
 0x1fd   : > { %v706_v11 = vadd.f32 %v701_v3, %v585_v4  ;;  %v742_v13 = vadd.f32 %v741_v10, %v740_v2 }
 0x1ff   : > { %v734_v12 = vsel %vm728_vm13, %v706_v11, 0.0 }
 0x200   : > { %v743_v25 = vsel %vm735_vm1, %v734_v12, 0.0 }
 0x201   : > { %v744_v7 = vadd.f32 %v743_v25, %v742_v13 }
 0x203   : > { %745 = vadd.xlane.f32.xlu1 %v744_v7 }
 0x290   : > { %v746_v14 = vpop.xlane.xlu1 %745 }
 0x291   : > { %v747_v15 = vrot.slane %v746_v14, 4 }
 0x293   : > { %v748_v18 = vadd.f32 %v747_v15, %v746_v14 }
 0x295   : > { %v749_v29 = vrot.slane %v748_v18, 2 }
 0x297   : > { %v750_v22 = vadd.f32 %v749_v29, %v748_v18 }
 0x299   : > { %v751_v32 = vrot.slane %v750_v22, 1 }
 0x29b   : > { %v752_v33 = vadd.f32 %v751_v32, %v750_v22 }
 0x29d   : > { %855 = vpush %v752_v33 }
 0x2ce   : > { %s856_s9 = spop %855 }
 0x2cf   : > { %v754_v35 = vstv %s856_s9 }
 0x2d0   : > { %v755_v36 = vadd.f32 %v754_v35, %v729_v34 }
 0x2d2   : > { %756 = vst.msk [vmem:[%s1159_s4] sm:$0x1] %vm735_vm1, %v755_v36 }
 0x2d3 PF: > { %s14_s13 = sadd.s32 1, %s1021_s13   ;;  %s1523_s6 = smov %s997_s7 }
 0x2d4   : > { %p11_p7 = scmp.ge.s32.totalorder %s14_s13, 20   ;;  %s1524_s7 = smov %s1001_s8 }
 0x2d5   : > { %s1525_s8 = smov %s1099_s22  ;;  %s1526_s9 = smov %s1013_s11 }
 0x2d6   : > { %s1527_s10 = smov %s1017_s12  ;;  %s1528_s11 = smov %s1531_s14 }
 0x2d7   : > { %s1529_s12 = smov %s1535_s15  ;;  %13 = sbr.rel (!%p11_p7) target bundleno = 5 (0x5), region = 75 }
 0x2de   :  { %774 = vsyncpa [#allocation4], 1 }
 0x2df   :  { %776 = vsyncpa [#allocation4 + $0x1], 1 }

</bundles_post_ra>
